<compile_context>
chip_gen: v7x
topology: tpu7x:2x2x1
jax: 0.10.0
libtpu: 0.0.40
codegen_flags: <defaults>
</compile_context>

<pallas_src>
import jax
import jax.numpy as jnp
from jax.experimental import pallas as pl
from jax.experimental.pallas import tpu as pltpu


_FINAL_ACTS = {
    "sigmoid": jax.nn.sigmoid,
    "relu": lambda v: jnp.maximum(v, 0.0),
    "none": lambda v: v,
}


def _round_up(x, m):
    return ((x + m - 1) // m) * m


def _make_kernel(num_hidden, final_act):
    act = _FINAL_ACTS[final_act]

    def kernel(*refs):
        x_ref, *wb, o_ref = refs
        h = x_ref[...]                                   # (TM, D) bf16
        # Hidden layers: bf16 MXU matmul, f32 accumulate, f32 bias + ReLU.
        for li in range(num_hidden):
            w_ref, b_ref = wb[2 * li], wb[2 * li + 1]
            h = jnp.dot(h.astype(jnp.bfloat16), w_ref[...],
                        preferred_element_type=jnp.float32) + b_ref[...]
            h = jnp.maximum(h, 0.0)                      # f32
        # Output layer: f32 matmul against the zero-padded, lane-dense weight slab.
        w_ref, b_ref = wb[-2], wb[-1]
        out = jnp.dot(h, w_ref[...], preferred_element_type=jnp.float32) + b_ref[...]
        o_ref[...] = act(out)                            # (TM, OUT_PAD) f32, unmasked vst

    return kernel


def fully_connected_forward(data, params, final_act="sigmoid"):
    """data: (batch, historic_input+1, num_feats) float32. Returns (batch, out_dim) float32."""
    batch = data.shape[0]
    input_size = data.shape[1] * data.shape[2]
    num_hidden = len(params) // 2 - 1
    w_out, b_out = params[-2], params[-1]
    out_dim = w_out.shape[1]

    # TransformFF(flatten=True): contiguous merge-reshape; cast the streamed operand to bf16
    # so the x DMA bytes are halved and the MXU runs native bf16.
    x = data.reshape(batch, input_size).astype(jnp.bfloat16)

    # Batch tile: multiple of 256 for large batches (MXU-friendly), otherwise pad batch to 8.
    if batch >= 1024:
        tm = 1024
    elif batch >= 256:
        tm = 256
    else:
        tm = _round_up(batch, 8)
    padded_batch = _round_up(batch, tm)
    if padded_batch != batch:
        x = jnp.pad(x, ((0, padded_batch - batch), (0, 0)))
    num_blocks = padded_batch // tm

    out_pad = _round_up(max(out_dim, 128), 128)  # lane-dense output slab width

    # Kernel operands: hidden weights bf16, biases f32; output layer zero-padded f32.
    ops = []
    for li in range(num_hidden):
        w, b = params[2 * li], params[2 * li + 1]
        ops.append(w.astype(jnp.bfloat16))
        ops.append(b.astype(jnp.float32))
    w_pad = jnp.zeros((w_out.shape[0], out_pad), jnp.float32)
    w_pad = w_pad.at[:, :out_dim].set(w_out.astype(jnp.float32))
    b_pad = jnp.zeros((1, out_pad), jnp.float32)
    b_pad = b_pad.at[:, :out_dim].set(b_out.reshape(1, -1).astype(jnp.float32))
    ops.extend([w_pad, b_pad])

    # BlockSpecs: x/out tiled along batch; weights/biases full-array, constant block index
    # (DMA'd once, VMEM-resident across the whole grid).
    in_specs = [pl.BlockSpec((tm, input_size), lambda i: (i, 0))]
    in_specs += [pl.BlockSpec(o.shape, lambda i: (0, 0)) for o in ops]
    out_specs = pl.BlockSpec((tm, out_pad), lambda i: (i, 0))

    # Advisory cost estimate for XLA scheduling.
    dims = [input_size] + [params[2 * li].shape[1] for li in range(num_hidden)] + [out_dim]
    flops = 2 * padded_batch * sum(dims[i] * dims[i + 1] for i in range(len(dims) - 1))
    transcendentals = padded_batch * out_dim if final_act == "sigmoid" else 0
    bytes_accessed = (
        x.size * x.dtype.itemsize
        + sum(int(o.size) * o.dtype.itemsize for o in ops)
        + padded_batch * out_pad * 4
    )

    kernel = _make_kernel(num_hidden, final_act)

    out_padded = pl.pallas_call(
        kernel,
        out_shape=jax.ShapeDtypeStruct((padded_batch, out_pad), jnp.float32),
        grid=(num_blocks,),
        in_specs=in_specs,
        out_specs=out_specs,
        compiler_params=pltpu.CompilerParams(
            dimension_semantics=("parallel",),  # megacore sharding on v7x; no-op on v5e/v6e
        ),
        cost_estimate=pl.CostEstimate(
            flops=int(flops),
            transcendentals=int(transcendentals),
            bytes_accessed=int(bytes_accessed),
        ),
    )(x, *ops)

    return out_padded[:batch, :out_dim]


def init_params(key, num_feats, historic_input=5, layers=(128, 64), out_dim=1):
    """Deterministic init mimicking nn.Linear's U(-1/sqrt(fan_in), 1/sqrt(fan_in)).
    Weights stored as (in_features, out_features), biases as (1, out_features)."""
    input_size = num_feats * (historic_input + 1)
    dims = [input_size, *layers, out_dim]
    params = []
    for i in range(len(dims) - 1):
        fan_in, fan_out = dims[i], dims[i + 1]
        key, kw, kb = jax.random.split(key, 3)
        bound = 1.0 / jnp.sqrt(jnp.float32(fan_in))
        w = jax.random.uniform(kw, (fan_in, fan_out), jnp.float32, -bound, bound)
        b = jax.random.uniform(kb, (1, fan_out), jnp.float32, -bound, bound)
        params.extend([w, b])
    return tuple(params)


if __name__ == "__main__":
    # Shapes consistent with the module: num_feats=16, historic_input=5 -> input_size=96.
    batch = 8
    num_feats = 16
    historic_input = 5
    out_dim = 1
    layers = (128, 64)

    key = jax.random.PRNGKey(0)
    key, kdata = jax.random.split(key)
    data = jax.random.normal(kdata, (batch, historic_input + 1, num_feats), jnp.float32)

    params = init_params(key, num_feats, historic_input, layers, out_dim)

    out = fully_connected_forward(data, params)
    out = jax.block_until_ready(out)

    assert out.shape == (batch, out_dim)
    assert bool(jnp.all((out >= 0.0) & (out <= 1.0)))  # sigmoid range sanity check

    # Pure-JAX f32 reference (tolerance accounts for bf16 hidden-layer matmul path).
    x_ref = data.reshape(batch, -1)
    w1, b1, w2, b2, w3, b3 = params
    h = jnp.maximum(x_ref @ w1 + b1, 0.0)
    h = jnp.maximum(h @ w2 + b2, 0.0)
    ref = jax.nn.sigmoid(h @ w3 + b3)
    assert bool(jnp.allclose(out, ref, atol=3e-2, rtol=3e-2))

    print("KERNEL_OK")
</pallas_src>

<mosaic_0001>
module attributes {stable_mosaic.version = 11 : i64} {
  func.func @kernel(%arg0: i32, %arg1: memref<8x96xbf16, #tpu.memory_space<vmem>>, %arg2: memref<96x128xbf16, #tpu.memory_space<vmem>>, %arg3: memref<1x128xf32, #tpu.memory_space<vmem>>, %arg4: memref<128x64xbf16, #tpu.memory_space<vmem>>, %arg5: memref<1x64xf32, #tpu.memory_space<vmem>>, %arg6: memref<64x128xf32, #tpu.memory_space<vmem>>, %arg7: memref<1x128xf32, #tpu.memory_space<vmem>>, %arg8: memref<8x128xf32, #tpu.memory_space<vmem>>) attributes {dimension_semantics = [#tpu.dimension_semantics<parallel>], iteration_bounds = array<i64: 1>, scalar_prefetch = 0 : i64, scratch_operands = 0 : i64, tpu.core_type = #tpu.core_type<tc>, window_params = [{transform_indices = @transform_0, window_bounds = array<i64: 8, 96>}, {pipeline_mode = #tpu.pipeline_mode<synchronous>, transform_indices = @transform_1, window_bounds = array<i64: 96, 128>}, {pipeline_mode = #tpu.pipeline_mode<synchronous>, transform_indices = @transform_2, window_bounds = array<i64: 1, 128>}, {pipeline_mode = #tpu.pipeline_mode<synchronous>, transform_indices = @transform_3, window_bounds = array<i64: 128, 64>}, {pipeline_mode = #tpu.pipeline_mode<synchronous>, transform_indices = @transform_4, window_bounds = array<i64: 1, 64>}, {pipeline_mode = #tpu.pipeline_mode<synchronous>, transform_indices = @transform_5, window_bounds = array<i64: 64, 128>}, {pipeline_mode = #tpu.pipeline_mode<synchronous>, transform_indices = @transform_6, window_bounds = array<i64: 1, 128>}, {transform_indices = @transform_7, window_bounds = array<i64: 8, 128>}]} {
    %c0 = arith.constant 0 : index
    %c0_0 = arith.constant 0 : index
    %0 = vector.load %arg1[%c0, %c0_0] : memref<8x96xbf16, #tpu.memory_space<vmem>>, vector<8x96xbf16>
    %c0_1 = arith.constant 0 : index
    %c0_2 = arith.constant 0 : index
    %1 = vector.load %arg2[%c0_1, %c0_2] : memref<96x128xbf16, #tpu.memory_space<vmem>>, vector<96x128xbf16>
    %cst = arith.constant dense<0.000000e+00> : vector<8x128xf32>
    %2 = tpu.matmul %0, %1, %cst {dimension_numbers = #tpu.dot_dimension_numbers<[1], [0], [0], [1], [0, 0, 1, 1], [], []>} : vector<8x96xbf16>, vector<96x128xbf16>, vector<8x128xf32> -> vector<8x128xf32>
    %c0_3 = arith.constant 0 : index
    %c0_4 = arith.constant 0 : index
    %3 = vector.load %arg3[%c0_3, %c0_4] : memref<1x128xf32, #tpu.memory_space<vmem>>, vector<1x128xf32>
    %4 = vector.broadcast %3 : vector<1x128xf32> to vector<8x128xf32>
    %5 = arith.addf %2, %4 : vector<8x128xf32>
    %cst_5 = arith.constant 0.000000e+00 : f32
    %6 = vector.broadcast %cst_5 : f32 to vector<8x128xf32>
    %7 = arith.maximumf %5, %6 : vector<8x128xf32>
    %8 = arith.truncf %7 : vector<8x128xf32> to vector<8x128xbf16>
    %c0_6 = arith.constant 0 : index
    %c0_7 = arith.constant 0 : index
    %9 = vector.load %arg4[%c0_6, %c0_7] : memref<128x64xbf16, #tpu.memory_space<vmem>>, vector<128x64xbf16>
    %cst_8 = arith.constant dense<0.000000e+00> : vector<8x64xf32>
    %10 = tpu.matmul %8, %9, %cst_8 {dimension_numbers = #tpu.dot_dimension_numbers<[1], [0], [0], [1], [0, 0, 1, 1], [], []>} : vector<8x128xbf16>, vector<128x64xbf16>, vector<8x64xf32> -> vector<8x64xf32>
    %c0_9 = arith.constant 0 : index
    %c0_10 = arith.constant 0 : index
    %11 = vector.load %arg5[%c0_9, %c0_10] : memref<1x64xf32, #tpu.memory_space<vmem>>, vector<1x64xf32>
    %12 = vector.broadcast %11 : vector<1x64xf32> to vector<8x64xf32>
    %13 = arith.addf %10, %12 : vector<8x64xf32>
    %cst_11 = arith.constant 0.000000e+00 : f32
    %14 = vector.broadcast %cst_11 : f32 to vector<8x64xf32>
    %15 = arith.maximumf %13, %14 : vector<8x64xf32>
    %c0_12 = arith.constant 0 : index
    %c0_13 = arith.constant 0 : index
    %16 = vector.load %arg6[%c0_12, %c0_13] : memref<64x128xf32, #tpu.memory_space<vmem>>, vector<64x128xf32>
    %cst_14 = arith.constant dense<0.000000e+00> : vector<8x128xf32>
    %17 = tpu.matmul %15, %16, %cst_14 {dimension_numbers = #tpu.dot_dimension_numbers<[1], [0], [0], [1], [0, 0, 1, 1], [], []>} : vector<8x64xf32>, vector<64x128xf32>, vector<8x128xf32> -> vector<8x128xf32>
    %c0_15 = arith.constant 0 : index
    %c0_16 = arith.constant 0 : index
    %18 = vector.load %arg7[%c0_15, %c0_16] : memref<1x128xf32, #tpu.memory_space<vmem>>, vector<1x128xf32>
    %19 = vector.broadcast %18 : vector<1x128xf32> to vector<8x128xf32>
    %20 = arith.addf %17, %19 : vector<8x128xf32>
    %21 = arith.negf %20 : vector<8x128xf32>
    %22 = math.exp %21 : vector<8x128xf32>
    %cst_17 = arith.constant 1.000000e+00 : f32
    %23 = vector.broadcast %cst_17 : f32 to vector<8x128xf32>
    %24 = arith.addf %23, %22 : vector<8x128xf32>
    %25 = arith.divf %23, %24 : vector<8x128xf32>
    %c0_18 = arith.constant 0 : index
    %c0_19 = arith.constant 0 : index
    %26 = vector.load %arg8[%c0_18, %c0_19] : memref<8x128xf32, #tpu.memory_space<vmem>>, vector<8x128xf32>
    tpu.vector_store %arg8[%c0_18, %c0_19], %25 {strides = array<i32>} : memref<8x128xf32, #tpu.memory_space<vmem>>, vector<8x128xf32>,
    return
  }
  func.func @transform_0(%arg0: i32) -> (i32, i32) {
    %c0_i32 = arith.constant 0 : i32
    %c0_i32_0 = arith.constant 0 : i32
    return %arg0, %c0_i32 : i32, i32
  }
  func.func @transform_1(%arg0: i32) -> (i32, i32) {
    %c0_i32 = arith.constant 0 : i32
    %c0_i32_0 = arith.constant 0 : i32
    %c0_i32_1 = arith.constant 0 : i32
    return %c0_i32, %c0_i32_0 : i32, i32
  }
  func.func @transform_2(%arg0: i32) -> (i32, i32) {
    %c0_i32 = arith.constant 0 : i32
    %c0_i32_0 = arith.constant 0 : i32
    %c0_i32_1 = arith.constant 0 : i32
    return %c0_i32, %c0_i32_0 : i32, i32
  }
  func.func @transform_3(%arg0: i32) -> (i32, i32) {
    %c0_i32 = arith.constant 0 : i32
    %c0_i32_0 = arith.constant 0 : i32
    %c0_i32_1 = arith.constant 0 : i32
    return %c0_i32, %c0_i32_0 : i32, i32
  }
  func.func @transform_4(%arg0: i32) -> (i32, i32) {
    %c0_i32 = arith.constant 0 : i32
    %c0_i32_0 = arith.constant 0 : i32
    %c0_i32_1 = arith.constant 0 : i32
    return %c0_i32, %c0_i32_0 : i32, i32
  }
  func.func @transform_5(%arg0: i32) -> (i32, i32) {
    %c0_i32 = arith.constant 0 : i32
    %c0_i32_0 = arith.constant 0 : i32
    %c0_i32_1 = arith.constant 0 : i32
    return %c0_i32, %c0_i32_0 : i32, i32
  }
  func.func @transform_6(%arg0: i32) -> (i32, i32) {
    %c0_i32 = arith.constant 0 : i32
    %c0_i32_0 = arith.constant 0 : i32
    %c0_i32_1 = arith.constant 0 : i32
    return %c0_i32, %c0_i32_0 : i32, i32
  }
  func.func @transform_7(%arg0: i32) -> (i32, i32) {
    %c0_i32 = arith.constant 0 : i32
    %c0_i32_0 = arith.constant 0 : i32
    return %arg0, %c0_i32 : i32, i32
  }
}

</mosaic_0001>

<bundles_post_ra>
// kernel: tpu_custom_call.1
= control target key start
LH: loop header
LB: loop body
LE: loop exit
PB: predicated region body
PF: predicated region fallthrough
CT: control target
= control target key end

     0   :  { %12 = vsyncpa [#allocation3], 0  ;;  %s695_s0 = inlined_call_operand.hbm [shape: bf16[8,96], index: 0, kind: input, shape index: {}]   ;;  %s696_s1 = inlined_call_operand.vmem [shape: bf16[96,128], index: 1, kind: input, shape index: {}]   ;;  %s697_s2 = inlined_call_operand.vmem [shape: f32[1,128], index: 2, kind: input, shape index: {}]   ;;  %s698_s3 = inlined_call_operand.vmem [shape: bf16[128,64], index: 3, kind: input, shape index: {}]   ;;  %s699_s4 = inlined_call_operand.vmem [shape: f32[1,64], index: 4, kind: input, shape index: {}]   ;;  %s700_s5 = inlined_call_operand.vmem [shape: f32[64,128], index: 5, kind: input, shape index: {}]   ;;  %s701_s6 = inlined_call_operand.vmem [shape: f32[1,128], index: 6, kind: input, shape index: {}]   ;;  %s702_s7 = inlined_call_operand.hbm [shape: f32[8,128], index: 7, kind: output, shape index: {}]  }
   0x1   :  { %13 = vsyncpa [#allocation4], 0  ;;  %s548_s24 = smov [#allocation2]   ;;  %s500_s28 = scalar_lea.hbm %s695_s0, 64 }
   0x2   :  { %s20_s25 = sshll.u32 %s548_s24, 4  ;;  %p501_p0 = scmp.ne.s32.totalorder %s695_s0, %s500_s28  ;;  %s21_s25 = int_to_ptr.vmem [resolvable:$true] %s20_s25 }
   0x3   :  { %p504_p1 = scmp.lt.u32.totalorder %s500_s28, %s695_s0 }
   0x5   :  { %p506_p2 = pnand %p504_p1, %p501_p0 }
   0x7   :  { %509 = shalt.err (!%p506_p2)
}
   0x8   :  { %s510_s10 = scalar_lea.vmem %s21_s25, 64  ;;  %p515_p4 = scmp.lt.s32.totalorder %s21_s25, %s21_s25 }
   0x9   :  { %p511_p3 = scmp.ne.s32.totalorder %s21_s25, %s510_s10  ;;  %p516_p5 = scmp.lt.s32.totalorder %s510_s10, %s510_s10 }
   0xb   :  { %p517_p6 = por %p516_p5, %p515_p4 }
   0xd   :  { %p518_p7 = pnand %p517_p6, %p511_p3 }
   0xf   :  { %521 = shalt.err (!%p518_p7)
}
  0x10   :  { %23 = dma.hbm_to_vmem [thread:$0]  %s695_s0, 64, %s21_s25, [#allocation3]  }
  0x11   :  { %544 = dma.done.wait [#allocation3], 64  }
  0x12   :  { %545 = vsyncadd [#allocation3], 4294967232  ;;  %v549_v0 = vmov 0.0   ;;  %vm550_vm0 = vmmov 0   ;;  %v482_v1 = vld [vmem:[%s696_s1] sm:$0xff]   ;;  %v483_v2 = vld [vmem:[%s696_s1 + $0x8] sm:$0xff]  }
  0x13   :  { %410 = vmatprep.subr.bf16.mxu0 %v549_v0  ;;  %422 = vmatprep.mubr.msk.bf16.mxu0 %vm550_vm0, %v549_v0  ;;  %v484_v3 = vld [vmem:[%s696_s1 + $0x10] sm:$0xff]   ;;  %v488_v4 = vld [vmem:[%s698_s3] sm:$0xff]   ;;  %v489_v5 = vld [vmem:[%s698_s3 + $0x8] sm:$0xff]   ;;  %vm96_vm1 = vcmask 785408   ;;  %v551_v19 = vmov 0.0|0.0   ;;  %vm269_vm2 = vcmask 523264  }
  0x14   :  { %426 = vmatprep.subr.bf16.mxu1 %v549_v0  ;;  %442 = vmatprep.mubr.msk.bf16.mxu1 %vm550_vm0, %v549_v0  ;;  %v485_v6 = vld [vmem:[%s696_s1 + $0x18] sm:$0xff]   ;;  %v490_v7 = vld [vmem:[%s698_s3 + $0x10] sm:$0xff]   ;;  %v486_v8 = vld [vmem:[%s696_s1 + $0x20] sm:$0xff]  }
  0x15   :  { %411 = vmatpush3.bf16.msra.mxu0 %v482_v1  ;;  %427 = vmatpush3.bf16.msra.mxu1 %v488_v4  ;;  %v491_v9 = vld [vmem:[%s698_s3 + $0x18] sm:$0xff]   ;;  %v487_v10 = vld [vmem:[%s696_s1 + $0x28] sm:$0xff]   ;;  %v492_v11 = vld [vmem:[%s698_s3 + $0x20] sm:$0xff]  }
  0x16   :  { %412 = vmatprep.subr.bf16.mxu0 %v549_v0  ;;  %428 = vmatprep.subr.bf16.mxu1 %v549_v0  ;;  %v40_v12 = vld [vmem:[#allocation2] sm:$0xf]  ;;  %v493_v13 = vld [vmem:[%s698_s3 + $0x28] sm:$0xff]   ;;  %v494_v14 = vld [vmem:[%s698_s3 + $0x30] sm:$0xff]  }
  0x17   :  { %v495_v15 = vld [vmem:[%s698_s3 + $0x38] sm:$0xff]   ;;  %v254_v16 = vld [vmem:[%s700_s5] sm:$0xff]  ;;  %v255_v17 = vld [vmem:[%s700_s5 + $0x8] sm:$0xff] }
  0x18   :  { %v256_v18 = vld [vmem:[%s700_s5 + $0x10] sm:$0xff]  ;;  %v466_v20 = vpack.c.bf16 %v255_v17, %v254_v16  ;;  %v257_v21 = vld [vmem:[%s700_s5 + $0x18] sm:$0xff]  ;;  %v258_v23 = vld [vmem:[%s700_s5 + $0x20] sm:$0xff] }
  0x19   :  { %413 = vmatpush3.bf16.msra.mxu0 %v483_v2  ;;  %429 = vmatpush3.bf16.msra.mxu1 %v489_v5  ;;  %v469_v22 = vpack.c.bf16 %v257_v21, %v256_v18  ;;  %v259_v24 = vld [vmem:[%s700_s5 + $0x28] sm:$0xff]  ;;  %v365_v26 = vld [vmem:[%s697_s2] ss:$0 sm:$0xff]  ;;  %v260_v34 = vld [vmem:[%s700_s5 + $0x30] sm:$0xff] }
  0x1a   :  { %414 = vmatprep.subr.bf16.mxu0 %v549_v0  ;;  %430 = vmatprep.subr.bf16.mxu1 %v549_v0  ;;  %v472_v25 = vpack.c.bf16 %v259_v24, %v258_v23  ;;  %v261_v35 = vld [vmem:[%s700_s5 + $0x38] sm:$0xff]  ;;  %v373_v37 = vld [vmem:[%s699_s4] ss:$0 sm:$0xff]  ;;  %s552_s4 = smov [#allocation5]  }
  0x1b   :  { %v475_v36 = vpack.c.bf16 %v261_v35, %v260_v34  ;;  %v382_v44 = vld [vmem:[%s701_s6] ss:$0 sm:$0xff]  ;;  %s356_s5 = sshll.u32 %s552_s4, 4  ;;  %s357_s5 = int_to_ptr.vmem [resolvable:$true] %s356_s5 }
  0x1c   :  { %s522_s12 = scalar_lea.vmem %s357_s5, 128  ;;  %p527_p9 = scmp.lt.s32.totalorder %s357_s5, %s357_s5 }
  0x1d   :  { %415 = vmatpush3.bf16.msra.mxu0 %v484_v3  ;;  %431 = vmatpush3.bf16.msra.mxu1 %v490_v7  ;;  %p523_p8 = scmp.ne.s32.totalorder %s357_s5, %s522_s12  ;;  %p528_p10 = scmp.lt.s32.totalorder %s522_s12, %s522_s12 }
  0x1e   :  { %416 = vmatprep.subr.bf16.mxu0 %v549_v0  ;;  %432 = vmatprep.subr.bf16.mxu1 %v549_v0 }
  0x1f   :  { %p529_p11 = por %p528_p10, %p527_p9 }
  0x21   :  { %417 = vmatpush3.bf16.msra.mxu0 %v485_v6  ;;  %433 = vmatpush3.bf16.msra.mxu1 %v491_v9  ;;  %p530_p12 = pnand %p529_p11, %p523_p8 }
  0x22   :  { %418 = vmatprep.subr.bf16.mxu0 %v549_v0  ;;  %434 = vmatprep.subr.bf16.mxu1 %v549_v0 }
  0x25   :  { %419 = vmatpush3.bf16.msra.mxu0 %v486_v8  ;;  %435 = vmatpush3.bf16.msra.mxu1 %v492_v11 }
  0x26   :  { %420 = vmatprep.subr.bf16.mxu0 %v549_v0  ;;  %436 = vmatprep.subr.bf16.mxu1 %v549_v0 }
  0x29   :  { %421 = vmatpush3.bf16.msra.mxu0 %v487_v10  ;;  %437 = vmatpush3.bf16.msra.mxu1 %v493_v13 }
  0x2a   :  { %438 = vmatprep.subr.bf16.mxu1 %v549_v0  ;;  %465 = vmatprep.subr.bf16.mxu0 %v551_v19 }
  0x2c   :  { %423 = vmatmul.mubr.msk.bf16.vlgmr.msra.gmra.mrb[0].mxu0 %vm96_vm1, %v40_v12 }
  0x2d   :  { %462 = vmatprep.mubr.msk.f32.mxu0 %vm550_vm0, %v549_v0  ;;  %439 = vmatpush3.bf16.msra.mxu1 %v494_v14 }
  0x2e   :  { %440 = vmatprep.subr.bf16.mxu1 %v549_v0  ;;  %467 = vmatpush3.bf16.msra.mxu0 %v466_v20 }
  0x2f   :  { %468 = vmatprep.subr.bf16.mxu0 %v551_v19 }
  0x31   :  { %441 = vmatpush3.bf16.msra.mxu1 %v495_v15 }
  0x32   :  { %470 = vmatpush3.bf16.msra.mxu0 %v469_v22 }
  0x33   :  { %471 = vmatprep.subr.bf16.mxu0 %v551_v19 }
  0x36   :  { %473 = vmatpush3.bf16.msra.mxu0 %v472_v25 }
  0x37   :  { %474 = vmatprep.subr.bf16.mxu0 %v551_v19 }
  0x3a   :  { %476 = vmatpush3.bf16.msra.mxu0 %v475_v36 }
  0xff   :  { %v134_v27 = vpop.f32.mrb[0].mxu0 }
 0x100   :  { %v135_v28 = vadd.f32 %v365_v26, %v134_v27  ;;  %v424_v29 = vpop.f32.mrb[1].mxu0 }
 0x101   :  { %v137_v30 = vpop.f32.mrb[2].mxu0 }
 0x102   :  { %v140_v31 = vmax.f32 %v135_v28, 0.0  ;;  %v425_v32 = vpop.f32.mrb[3].mxu0 }
 0x104   :  { %v141_v33 = vpack.c.bf16 %v140_v31, %v140_v31 }
 0x106   :  { %443 = vmatmul.mubr.bf16.vlgmr.msra.gmra.mrb[0].mxu1 %v141_v33 }
 0x1d9   :  { %v247_v38 = vpop.f32.mrb[0].mxu1 }
 0x1da   :  { %v248_v39 = vadd.f32 %v373_v37, %v247_v38  ;;  %v444_v40 = vpop.f32.mrb[1].mxu1 }
 0x1db   :  { %v250_v41 = vpop.f32.mrb[2].mxu1 }
 0x1dc   :  { %v253_v42 = vmax.f32 %v248_v39, 0.0  ;;  %v445_v43 = vpop.f32.mrb[3].mxu1 }
 0x1de   :  { %463 = vmatmul.mubr.msk.f32.vlgmr.msra.gmra.mrb[4].mxu0 %vm269_vm2, %v253_v42 }
 0x2b1   :  { %v339_v45 = vpop.f32.mrb[4].mxu0 }
 0x2b2   :  { %v340_v46 = vadd.f32 %v382_v44, %v339_v45  ;;  %v464_v47 = vpop.f32.mrb[5].mxu0 }
 0x2b4   :  { %v384_v48 = vmul.f32 -1.442695, %v340_v46 }
 0x2b6   :  { %496 = vpow2.f32 %v384_v48 }
 0x2c0   :  { %v497_v49 = vpop.eup %496 }
 0x2c1   :  { %v346_v50 = vadd.f32 1.0, %v497_v49 }
 0x2c3   :  { %498 = vrcp.f32 %v346_v50 }
 0x2cd   :  { %v499_v51 = vpop.eup %498 }
 0x2ce   :  { %349 = vst [vmem:[#allocation5] sm:$0xff] %v499_v51 }
 0x2cf   :  { %533 = shalt.err (!%p530_p12)
}
 0x2d0   :  { %s534_s13 = scalar_lea.hbm %s702_s7, 128 }
 0x2d1   :  { %p535_p13 = scmp.ne.s32.totalorder %s702_s7, %s534_s13  ;;  %p538_p0 = scmp.lt.u32.totalorder %s534_s13, %s702_s7 }
 0x2d3   :  { %p540_p1 = pnand %p538_p0, %p535_p13 }
 0x2d5   :  { %543 = shalt.err (!%p540_p1)
}
 0x2d6   :  { %359 = dma.vmem_to_hbm [thread:$0]  %s357_s5, 128, %s702_s7, [#allocation4]  }
 0x2d7   :  { %546 = dma.done.wait [#allocation4], 128  }
 0x2d8   :  { %547 = vsyncadd [#allocation4], 4294967168 }
 0x2d9   :  { %363 = vsyncpa [#allocation3], 1 }
 0x2da   :  { %364 = vsyncpa [#allocation4], 1 }

</bundles_post_ra>
